<compile_context>
chip_gen: v7x
topology: tpu7x:2x2x1
jax: 0.10.0
libtpu: 0.0.40
codegen_flags: <defaults>
</compile_context>

<pallas_src>
import functools
import math

import jax
import jax.numpy as jnp
from jax import lax
from jax.experimental import pallas as pl
from jax.experimental.pallas import tpu as pltpu


def _round_up(x: int, m: int) -> int:
    return ((x + m - 1) // m) * m


# ---------------------------------------------------------------------------
# Kernel 1: fused Q / K / V projections  (x @ W.T for the three Linears).
# ---------------------------------------------------------------------------
def _qkv_proj_kernel(x_ref, wq_ref, wk_ref, wv_ref, q_ref, k_ref, v_ref, *, scale):
    x = x_ref[...]                                   # (ts, d_in), native dtype
    dn = (((1,), (1,)), ((), ()))                    # contract x[-1] with w[-1] == x @ W.T
    q = lax.dot_general(x, wq_ref[...], dimension_numbers=dn,
                        preferred_element_type=jnp.float32)
    k = lax.dot_general(x, wk_ref[...], dimension_numbers=dn,
                        preferred_element_type=jnp.float32)
    v = lax.dot_general(x, wv_ref[...], dimension_numbers=dn,
                        preferred_element_type=jnp.float32)
    # Fold 1/sqrt(d_out) into Q (cheaper than scaling the seq x seq scores).
    q_ref[...] = (q * scale).astype(q_ref.dtype)
    k_ref[...] = k.astype(k_ref.dtype)
    v_ref[...] = v.astype(v_ref.dtype)


# ---------------------------------------------------------------------------
# Kernel 2: flash-style attention with online softmax over the kv grid axis.
# ---------------------------------------------------------------------------
def _flash_attn_kernel(q_ref, k_ref, v_ref, o_ref, m_sc, l_sc, acc_sc,
                       *, seq_len, seq_pad, block_kv):
    ki = pl.program_id(1)

    @pl.when(ki == 0)
    def _():
        m_sc[...] = jnp.full_like(m_sc, -jnp.inf)
        l_sc[...] = jnp.zeros_like(l_sc)
        acc_sc[...] = jnp.zeros_like(acc_sc)

    q = q_ref[...]                                   # (tq, d), already scaled
    k = k_ref[...]                                   # (tk, d)
    v = v_ref[...]                                   # (tk, d)

    # scores = q @ k.T without materializing a transpose of the K tile.
    s = lax.dot_general(q, k, dimension_numbers=(((1,), (1,)), ((), ())),
                        preferred_element_type=jnp.float32)   # (tq, tk) f32

    if seq_len < seq_pad:  # static: only emit the mask when padding exists
        key_pos = ki * block_kv + lax.broadcasted_iota(jnp.int32, s.shape, 1)
        s = jnp.where(key_pos < seq_len, s, -jnp.inf)

    m_prev = m_sc[...]
    m_new = jnp.maximum(m_prev, jnp.max(s, axis=-1, keepdims=True))
    alpha = jnp.exp(m_prev - m_new)
    p = jnp.exp(s - m_new)

    l_sc[...] = alpha * l_sc[...] + jnp.sum(p, axis=-1, keepdims=True)
    acc_sc[...] = alpha * acc_sc[...] + jnp.dot(
        p.astype(v.dtype), v, preferred_element_type=jnp.float32)
    m_sc[...] = m_new

    @pl.when(ki == pl.num_programs(1) - 1)
    def _():
        # EUP reciprocal (own VLIW slot) + one Newton step for f32 accuracy.
        l = l_sc[...]
        inv_l = pl.reciprocal(l, approx=True)
        inv_l = inv_l * (2.0 - l * inv_l)
        o_ref[...] = (acc_sc[...] * inv_l).astype(o_ref.dtype)


def self_attention_v2(x, wq, wk, wv, *, block_q=128, block_kv=128):
    """x: (seq, d_in); wq/wk/wv: (d_out, d_in) in nn.Linear layout."""
    seq, d_in = x.shape
    d_out = wq.shape[0]
    dtype = x.dtype

    # Pad to lane/sublane-friendly 128-granular shapes (exact: see header).
    seq_blk = math.lcm(block_q, block_kv)
    seq_p = _round_up(seq, seq_blk)
    d_in_p = _round_up(d_in, 128)
    d_out_p = _round_up(d_out, 128)

    x_p = jnp.pad(x, ((0, seq_p - seq), (0, d_in_p - d_in)))
    wq_p = jnp.pad(wq, ((0, d_out_p - d_out), (0, d_in_p - d_in)))
    wk_p = jnp.pad(wk, ((0, d_out_p - d_out), (0, d_in_p - d_in)))
    wv_p = jnp.pad(wv, ((0, d_out_p - d_out), (0, d_in_p - d_in)))

    scale = 1.0 / math.sqrt(float(d_out))   # uses the *original* d_out

    # --- Kernel 1: projections, tiled over the sequence -------------------
    block_s = block_q
    q, k, v = pl.pallas_call(
        functools.partial(_qkv_proj_kernel, scale=scale),
        out_shape=(
            jax.ShapeDtypeStruct((seq_p, d_out_p), dtype),
            jax.ShapeDtypeStruct((seq_p, d_out_p), dtype),
            jax.ShapeDtypeStruct((seq_p, d_out_p), dtype),
        ),
        grid_spec=pltpu.PrefetchScalarGridSpec(
            num_scalar_prefetch=0,
            grid=(seq_p // block_s,),
            in_specs=[
                pl.BlockSpec((block_s, d_in_p), lambda i: (i, 0)),
                pl.BlockSpec((d_out_p, d_in_p), lambda i: (0, 0)),
                pl.BlockSpec((d_out_p, d_in_p), lambda i: (0, 0)),
                pl.BlockSpec((d_out_p, d_in_p), lambda i: (0, 0)),
            ],
            out_specs=[
                pl.BlockSpec((block_s, d_out_p), lambda i: (i, 0)),
                pl.BlockSpec((block_s, d_out_p), lambda i: (i, 0)),
                pl.BlockSpec((block_s, d_out_p), lambda i: (i, 0)),
            ],
        ),
        compiler_params=pltpu.CompilerParams(dimension_semantics=("parallel",)),
    )(x_p, wq_p, wk_p, wv_p)

    # --- Kernel 2: flash attention over (query block, kv block) -----------
    out_p = pl.pallas_call(
        functools.partial(_flash_attn_kernel, seq_len=seq, seq_pad=seq_p,
                          block_kv=block_kv),
        out_shape=jax.ShapeDtypeStruct((seq_p, d_out_p), dtype),
        grid_spec=pltpu.PrefetchScalarGridSpec(
            num_scalar_prefetch=0,
            grid=(seq_p // block_q, seq_p // block_kv),
            in_specs=[
                pl.BlockSpec((block_q, d_out_p), lambda qi, ki: (qi, 0)),
                pl.BlockSpec((block_kv, d_out_p), lambda qi, ki: (ki, 0)),
                pl.BlockSpec((block_kv, d_out_p), lambda qi, ki: (ki, 0)),
            ],
            out_specs=pl.BlockSpec((block_q, d_out_p), lambda qi, ki: (qi, 0)),
            scratch_shapes=[
                pltpu.VMEM((block_q, 1), jnp.float32),       # running max
                pltpu.VMEM((block_q, 1), jnp.float32),       # running denom
                pltpu.VMEM((block_q, d_out_p), jnp.float32),  # f32 accumulator
            ],
        ),
        compiler_params=pltpu.CompilerParams(
            dimension_semantics=("parallel", "arbitrary"),   # qi across TCs on v7x
        ),
    )(q, k, v)

    return out_p[:seq, :d_out]


def _reference(x, wq, wk, wv):
    q = x @ wq.T
    k = x @ wk.T
    v = x @ wv.T
    scores = q @ k.T
    w = jax.nn.softmax(scores / (k.shape[-1] ** 0.5), axis=-1)
    return w @ v


if __name__ == "__main__":
    seq, d_in, d_out = 8, 32, 32

    key = jax.random.PRNGKey(0)
    kx, kq, kk, kv = jax.random.split(key, 4)

    x = jax.random.normal(kx, (seq, d_in), dtype=jnp.float32)

    # Deterministic init mimicking nn.Linear default: U(-1/sqrt(d_in), 1/sqrt(d_in)).
    bound = 1.0 / (d_in ** 0.5)
    wq = jax.random.uniform(kq, (d_out, d_in), jnp.float32, -bound, bound)
    wk = jax.random.uniform(kk, (d_out, d_in), jnp.float32, -bound, bound)
    wv = jax.random.uniform(kv, (d_out, d_in), jnp.float32, -bound, bound)

    out = self_attention_v2(x, wq, wk, wv)
    out = jax.block_until_ready(out)

    ref = _reference(x, wq, wk, wv)
    assert out.shape == (seq, d_out)
    assert jnp.allclose(out, ref, atol=1e-4, rtol=1e-4), float(
        jnp.max(jnp.abs(out - ref))
    )

    print("KERNEL_OK")
</pallas_src>

<mosaic_0001>
module attributes {stable_mosaic.version = 11 : i64} {
  func.func @_qkv_proj_kernel(%arg0: i32, %arg1: memref<128x128xf32, #tpu.memory_space<vmem>>, %arg2: memref<128x128xf32, #tpu.memory_space<vmem>>, %arg3: memref<128x128xf32, #tpu.memory_space<vmem>>, %arg4: memref<128x128xf32, #tpu.memory_space<vmem>>, %arg5: memref<128x128xf32, #tpu.memory_space<vmem>>, %arg6: memref<128x128xf32, #tpu.memory_space<vmem>>, %arg7: memref<128x128xf32, #tpu.memory_space<vmem>>) attributes {dimension_semantics = [#tpu.dimension_semantics<parallel>], iteration_bounds = array<i64: 1>, scalar_prefetch = 0 : i64, scratch_operands = 0 : i64, tpu.core_type = #tpu.core_type<tc>, window_params = [{transform_indices = @transform_0, window_bounds = array<i64: 128, 128>}, {pipeline_mode = #tpu.pipeline_mode<synchronous>, transform_indices = @transform_1, window_bounds = array<i64: 128, 128>}, {pipeline_mode = #tpu.pipeline_mode<synchronous>, transform_indices = @transform_2, window_bounds = array<i64: 128, 128>}, {pipeline_mode = #tpu.pipeline_mode<synchronous>, transform_indices = @transform_3, window_bounds = array<i64: 128, 128>}, {transform_indices = @transform_4, window_bounds = array<i64: 128, 128>}, {transform_indices = @transform_5, window_bounds = array<i64: 128, 128>}, {transform_indices = @transform_6, window_bounds = array<i64: 128, 128>}]} {
    %c0 = arith.constant 0 : index
    %c0_0 = arith.constant 0 : index
    %0 = vector.load %arg1[%c0, %c0_0] : memref<128x128xf32, #tpu.memory_space<vmem>>, vector<128x128xf32>
    %c0_1 = arith.constant 0 : index
    %c0_2 = arith.constant 0 : index
    %1 = vector.load %arg2[%c0_1, %c0_2] : memref<128x128xf32, #tpu.memory_space<vmem>>, vector<128x128xf32>
    %cst = arith.constant dense<0.000000e+00> : vector<128x128xf32>
    %2 = tpu.matmul %0, %1, %cst {dimension_numbers = #tpu.dot_dimension_numbers<[1], [1], [0], [0], [0, 0, 1, 0], [], []>} : vector<128x128xf32>, vector<128x128xf32>, vector<128x128xf32> -> vector<128x128xf32>
    %c0_3 = arith.constant 0 : index
    %c0_4 = arith.constant 0 : index
    %3 = vector.load %arg3[%c0_3, %c0_4] : memref<128x128xf32, #tpu.memory_space<vmem>>, vector<128x128xf32>
    %cst_5 = arith.constant dense<0.000000e+00> : vector<128x128xf32>
    %4 = tpu.matmul %0, %3, %cst_5 {dimension_numbers = #tpu.dot_dimension_numbers<[1], [1], [0], [0], [0, 0, 1, 0], [], []>} : vector<128x128xf32>, vector<128x128xf32>, vector<128x128xf32> -> vector<128x128xf32>
    %c0_6 = arith.constant 0 : index
    %c0_7 = arith.constant 0 : index
    %5 = vector.load %arg4[%c0_6, %c0_7] : memref<128x128xf32, #tpu.memory_space<vmem>>, vector<128x128xf32>
    %cst_8 = arith.constant dense<0.000000e+00> : vector<128x128xf32>
    %6 = tpu.matmul %0, %5, %cst_8 {dimension_numbers = #tpu.dot_dimension_numbers<[1], [1], [0], [0], [0, 0, 1, 0], [], []>} : vector<128x128xf32>, vector<128x128xf32>, vector<128x128xf32> -> vector<128x128xf32>
    %cst_9 = arith.constant 0.176776692 : f32
    %7 = vector.broadcast %cst_9 : f32 to vector<128x128xf32>
    %8 = arith.mulf %2, %7 : vector<128x128xf32>
    %c0_10 = arith.constant 0 : index
    %c0_11 = arith.constant 0 : index
    %9 = vector.load %arg5[%c0_10, %c0_11] : memref<128x128xf32, #tpu.memory_space<vmem>>, vector<128x128xf32>
    tpu.vector_store %arg5[%c0_10, %c0_11], %8 {strides = array<i32>} : memref<128x128xf32, #tpu.memory_space<vmem>>, vector<128x128xf32>,
    %c0_12 = arith.constant 0 : index
    %c0_13 = arith.constant 0 : index
    %10 = vector.load %arg6[%c0_12, %c0_13] : memref<128x128xf32, #tpu.memory_space<vmem>>, vector<128x128xf32>
    tpu.vector_store %arg6[%c0_12, %c0_13], %4 {strides = array<i32>} : memref<128x128xf32, #tpu.memory_space<vmem>>, vector<128x128xf32>,
    %c0_14 = arith.constant 0 : index
    %c0_15 = arith.constant 0 : index
    %11 = vector.load %arg7[%c0_14, %c0_15] : memref<128x128xf32, #tpu.memory_space<vmem>>, vector<128x128xf32>
    tpu.vector_store %arg7[%c0_14, %c0_15], %6 {strides = array<i32>} : memref<128x128xf32, #tpu.memory_space<vmem>>, vector<128x128xf32>,
    return
  }
  func.func @transform_0(%arg0: i32) -> (i32, i32) {
    %c0_i32 = arith.constant 0 : i32
    %c0_i32_0 = arith.constant 0 : i32
    return %arg0, %c0_i32 : i32, i32
  }
  func.func @transform_1(%arg0: i32) -> (i32, i32) {
    %c0_i32 = arith.constant 0 : i32
    %c0_i32_0 = arith.constant 0 : i32
    %c0_i32_1 = arith.constant 0 : i32
    return %c0_i32, %c0_i32_0 : i32, i32
  }
  func.func @transform_2(%arg0: i32) -> (i32, i32) {
    %c0_i32 = arith.constant 0 : i32
    %c0_i32_0 = arith.constant 0 : i32
    %c0_i32_1 = arith.constant 0 : i32
    return %c0_i32, %c0_i32_0 : i32, i32
  }
  func.func @transform_3(%arg0: i32) -> (i32, i32) {
    %c0_i32 = arith.constant 0 : i32
    %c0_i32_0 = arith.constant 0 : i32
    %c0_i32_1 = arith.constant 0 : i32
    return %c0_i32, %c0_i32_0 : i32, i32
  }
  func.func @transform_4(%arg0: i32) -> (i32, i32) {
    %c0_i32 = arith.constant 0 : i32
    %c0_i32_0 = arith.constant 0 : i32
    return %arg0, %c0_i32 : i32, i32
  }
  func.func @transform_5(%arg0: i32) -> (i32, i32) {
    %c0_i32 = arith.constant 0 : i32
    %c0_i32_0 = arith.constant 0 : i32
    return %arg0, %c0_i32 : i32, i32
  }
  func.func @transform_6(%arg0: i32) -> (i32, i32) {
    %c0_i32 = arith.constant 0 : i32
    %c0_i32_0 = arith.constant 0 : i32
    return %arg0, %c0_i32 : i32, i32
  }
}

</mosaic_0001>

<bundles_post_ra>
// kernel: tpu_custom_call.1
= control target key start
LH: loop header
LB: loop body
LE: loop exit
PB: predicated region body
PF: predicated region fallthrough
CT: control target
= control target key end

     0   :  { %12 = vsyncpa [#allocation3], 0  ;;  %s1449_s0 = inlined_call_operand.hbm [shape: f32[128,128], index: 0, kind: input, shape index: {}]   ;;  %s1450_s1 = inlined_call_operand.hbm [shape: f32[128,128], index: 1, kind: input, shape index: {}]   ;;  %s1451_s2 = inlined_call_operand.hbm [shape: f32[128,128], index: 2, kind: input, shape index: {}]   ;;  %s1452_s3 = inlined_call_operand.hbm [shape: f32[128,128], index: 3, kind: input, shape index: {}]   ;;  %s1453_s4 = inlined_call_operand.hbm [shape: f32[128,128], index: 4, kind: output, shape index: {0}]   ;;  %s1454_s5 = inlined_call_operand.hbm [shape: f32[128,128], index: 5, kind: output, shape index: {1}]   ;;  %s1455_s6 = inlined_call_operand.hbm [shape: f32[128,128], index: 6, kind: output, shape index: {2}]  }
   0x1   :  { %13 = vsyncpa [#allocation6], 0 }
   0x2   :  { %14 = vsyncpa [#allocation9], 0 }
   0x3   :  { %15 = vsyncpa [#allocation4], 0 }
   0x4   :  { %16 = vsyncpa [#allocation12], 0  ;;  %s1239_s21 = smov [#allocation5]   ;;  %s1240_s23 = smov [#allocation2]  }
   0x5   :  { %s34_s22 = sshll.u32 %s1239_s21, 4  ;;  %s22_s24 = sshll.u32 %s1240_s23, 4  ;;  %s35_s22 = int_to_ptr.vmem [resolvable:$true] %s34_s22  ;;  %s1283_s24 = int_to_ptr.vmem [resolvable:$true] %s22_s24 }
   0x6   :  { %s1075_s27 = scalar_lea.hbm %s1450_s1, 2048 }
   0x7   :  { %p1076_p0 = scmp.ne.s32.totalorder %s1450_s1, %s1075_s27  ;;  %p1079_p1 = scmp.lt.u32.totalorder %s1075_s27, %s1450_s1 }
   0x9   :  { %p1081_p2 = pnand %p1079_p1, %p1076_p0 }
   0xb   :  { %1084 = shalt.err (!%p1081_p2)
}
   0xc   :  { %s1085_s8 = scalar_lea.vmem %s35_s22, 2048  ;;  %p1090_p4 = scmp.lt.s32.totalorder %s35_s22, %s35_s22 }
   0xd   :  { %p1086_p3 = scmp.ne.s32.totalorder %s35_s22, %s1085_s8  ;;  %p1091_p5 = scmp.lt.s32.totalorder %s1085_s8, %s1085_s8 }
   0xf   :  { %p1092_p6 = por %p1091_p5, %p1090_p4 }
  0x11   :  { %p1093_p7 = pnand %p1092_p6, %p1086_p3 }
  0x13   :  { %1096 = shalt.err (!%p1093_p7)
}
  0x14   :  { %s1241_s9 = smov 128   ;;  %s1242_s10 = smov 8  }
  0x15   :  { %40 = dma.hbm_to_vmem [thread:$0]  %s1450_s1, 2048, %s35_s22, [#allocation6], %s1241_s9, %s1241_s9, %s1242_s10  }
  0x16   :  { %s1097_s15 = scalar_lea.hbm %s1449_s0, 2048 }
  0x17   :  { %p1098_p8 = scmp.ne.s32.totalorder %s1449_s0, %s1097_s15  ;;  %p1101_p9 = scmp.lt.u32.totalorder %s1097_s15, %s1449_s0 }
  0x19   :  { %p1103_p10 = pnand %p1101_p9, %p1098_p8 }
  0x1b   :  { %1106 = shalt.err (!%p1103_p10)
}
  0x1c   :  { %s1107_s20 = scalar_lea.vmem %s1283_s24, 2048  ;;  %p1112_p12 = scmp.lt.s32.totalorder %s1283_s24, %s1283_s24 }
  0x1d   :  { %p1108_p11 = scmp.ne.s32.totalorder %s1283_s24, %s1107_s20  ;;  %p1113_p13 = scmp.lt.s32.totalorder %s1107_s20, %s1107_s20 }
  0x1f   :  { %p1114_p0 = por %p1113_p13, %p1112_p12 }
  0x21   :  { %p1115_p1 = pnand %p1114_p0, %p1108_p11 }
  0x23   :  { %1118 = shalt.err (!%p1115_p1)
}
  0x24   :  { %28 = dma.hbm_to_vmem [thread:$0]  %s1449_s0, 2048, %s1283_s24, [#allocation3], %s1241_s9, %s1241_s9, %s1242_s10  }
  0x25   :  { %s1243_s22 = smov [#allocation7]   ;;  %s1244_s25 = smov [#allocation8]  }
  0x26   :  { %s46_s23 = sshll.u32 %s1243_s22, 4  ;;  %s58_s26 = sshll.u32 %s1244_s25, 4  ;;  %s47_s23 = int_to_ptr.vmem [resolvable:$true] %s46_s23  ;;  %s1320_s26 = int_to_ptr.vmem [resolvable:$true] %s58_s26 }
  0x27   :  { %s1119_s29 = scalar_lea.hbm %s1451_s2, 2048 }
  0x28   :  { %p1120_p2 = scmp.ne.s32.totalorder %s1451_s2, %s1119_s29  ;;  %p1123_p3 = scmp.lt.u32.totalorder %s1119_s29, %s1451_s2 }
  0x2a   :  { %p1125_p4 = pnand %p1123_p3, %p1120_p2 }
  0x2c   :  { %1128 = shalt.err (!%p1125_p4)
}
  0x2d   :  { %s1129_s0 = scalar_lea.vmem %s47_s23, 2048  ;;  %p1134_p6 = scmp.lt.s32.totalorder %s47_s23, %s47_s23 }
  0x2e   :  { %p1130_p5 = scmp.ne.s32.totalorder %s47_s23, %s1129_s0  ;;  %p1135_p7 = scmp.lt.s32.totalorder %s1129_s0, %s1129_s0 }
  0x30   :  { %p1136_p8 = por %p1135_p7, %p1134_p6 }
  0x32   :  { %p1137_p9 = pnand %p1136_p8, %p1130_p5 }
  0x34   :  { %1140 = shalt.err (!%p1137_p9)
}
  0x35   :  { %52 = dma.hbm_to_vmem [thread:$0]  %s1451_s2, 2048, %s47_s23, [#allocation6], %s1241_s9, %s1241_s9, %s1242_s10  }
  0x36   :  { %s1141_s15 = scalar_lea.hbm %s1452_s3, 2048 }
  0x37   :  { %p1142_p10 = scmp.ne.s32.totalorder %s1452_s3, %s1141_s15  ;;  %p1145_p11 = scmp.lt.u32.totalorder %s1141_s15, %s1452_s3 }
  0x39   :  { %p1147_p12 = pnand %p1145_p11, %p1142_p10 }
  0x3b   :  { %1150 = shalt.err (!%p1147_p12)
}
  0x3c   :  { %s1151_s20 = scalar_lea.vmem %s1320_s26, 2048  ;;  %p1156_p0 = scmp.lt.s32.totalorder %s1320_s26, %s1320_s26 }
  0x3d   :  { %p1152_p13 = scmp.ne.s32.totalorder %s1320_s26, %s1151_s20  ;;  %p1157_p1 = scmp.lt.s32.totalorder %s1151_s20, %s1151_s20 }
  0x3f   :  { %p1158_p2 = por %p1157_p1, %p1156_p0 }
  0x41   :  { %p1159_p3 = pnand %p1158_p2, %p1152_p13 }
  0x43   :  { %1162 = shalt.err (!%p1159_p3)
}
  0x44   :  { %64 = dma.hbm_to_vmem [thread:$0]  %s1452_s3, 2048, %s1320_s26, [#allocation9], %s1241_s9, %s1241_s9, %s1242_s10  }
  0x45   :  { %1229 = dma.done.wait [#allocation3], 2048  }
  0x46   :  { %1230 = vsyncadd [#allocation3], 4294965248 }
  0x47   :  { %1231 = dma.done.wait [#allocation6], 4096  }
  0x48   :  { %1232 = vsyncadd [#allocation6], 4294963200 }
  0x49   :  { %1233 = dma.done.wait [#allocation9], 2048  }
  0x4a   :  { %1234 = vsyncadd [#allocation9], 4294965248  ;;  %v93_v0 = vld [vmem:[#allocation5] sm:$0xff]  ;;  %v94_v1 = vld [vmem:[#allocation5 + $0x8] sm:$0xff]  ;;  %s1245_s3 = smov [#allocation11]   ;;  %s1246_s22 = smov [#allocation10]  }
  0x4b   :  { %v254_v2 = vld [vmem:[#allocation7] sm:$0xff]  ;;  %v954_v3 = vpack.c.bf16 %v94_v1, %v93_v0  ;;  %v255_v4 = vld [vmem:[#allocation7 + $0x8] sm:$0xff]  ;;  %v95_v5 = vld [vmem:[#allocation5 + $0x10] sm:$0xff]  ;;  %s657_s21 = sshll.u32 %s1245_s3, 4  ;;  %s645_s23 = sshll.u32 %s1246_s22, 4  ;;  %s658_s21 = int_to_ptr.vmem [resolvable:$true] %s657_s21  ;;  %s1397_s23 = int_to_ptr.vmem [resolvable:$true] %s645_s23 }
  0x4c   :  { %v96_v6 = vld [vmem:[#allocation5 + $0x18] sm:$0xff]  ;;  %v986_v7 = vpack.c.bf16 %v255_v4, %v254_v2  ;;  %v256_v9 = vld [vmem:[#allocation7 + $0x10] sm:$0xff]  ;;  %v97_v12 = vld [vmem:[#allocation5 + $0x20] sm:$0xff]  ;;  %s1163_s25 = scalar_lea.vmem %s658_s21, 2048  ;;  %p1168_p5 = scmp.lt.s32.totalorder %s658_s21, %s658_s21 }
  0x4d   :  { %v958_v8 = vpack.c.bf16 %v96_v6, %v95_v5  ;;  %v257_v10 = vld [vmem:[#allocation7 + $0x18] sm:$0xff]  ;;  %955 = vmatprep.subr.bf16.mxu0 %v954_v3  ;;  %v98_v13 = vld [vmem:[#allocation5 + $0x28] sm:$0xff]  ;;  %v258_v14 = vld [vmem:[#allocation7 + $0x20] sm:$0xff]  ;;  %p1164_p4 = scmp.ne.s32.totalorder %s658_s21, %s1163_s25  ;;  %p1169_p6 = scmp.lt.s32.totalorder %s1163_s25, %s1163_s25 }
  0x4e   :  { %v990_v11 = vpack.c.bf16 %v257_v10, %v256_v9  ;;  %987 = vmatprep.subr.bf16.mxu1 %v986_v7  ;;  %957 = vmatpush3.bf16.xpose.msra.mxu0 %v954_v3  ;;  %v259_v15 = vld [vmem:[#allocation7 + $0x28] sm:$0xff]  ;;  %v962_v16 = vpack.c.bf16 %v98_v13, %v97_v12  ;;  %v1357_v18 = vld [vmem:[#allocation2] sm:$0xff]  ;;  %v99_v19 = vld [vmem:[#allocation5 + $0x30] sm:$0xff] }
  0x4f   :  { %989 = vmatpush3.bf16.xpose.msra.mxu1 %v986_v7  ;;  %959 = vmatprep.subr.bf16.mxu0 %v958_v8  ;;  %v994_v17 = vpack.c.bf16 %v259_v15, %v258_v14  ;;  %v100_v20 = vld [vmem:[#allocation5 + $0x38] sm:$0xff]  ;;  %v260_v21 = vld [vmem:[#allocation7 + $0x30] sm:$0xff]  ;;  %v101_v25 = vld [vmem:[#allocation5 + $0x40] sm:$0xff]  ;;  %p1170_p7 = por %p1169_p6, %p1168_p5 }
  0x50   :  { %991 = vmatprep.subr.bf16.mxu1 %v990_v11  ;;  %818 = vmatprep.mubr.f32.mxu0 %v1357_v18  ;;  %v261_v22 = vld [vmem:[#allocation7 + $0x38] sm:$0xff]  ;;  %v966_v23 = vpack.c.bf16 %v100_v20, %v99_v19  ;;  %v102_v26 = vld [vmem:[#allocation5 + $0x48] sm:$0xff]  ;;  %v262_v27 = vld [vmem:[#allocation7 + $0x40] sm:$0xff] }
  0x51   :  { %874 = vmatprep.mubr.f32.mxu1 %v1357_v18  ;;  %v998_v24 = vpack.c.bf16 %v261_v22, %v260_v21  ;;  %v263_v28 = vld [vmem:[#allocation7 + $0x48] sm:$0xff]  ;;  %v970_v29 = vpack.c.bf16 %v102_v26, %v101_v25  ;;  %v103_v31 = vld [vmem:[#allocation5 + $0x50] sm:$0xff]  ;;  %v104_v32 = vld [vmem:[#allocation5 + $0x58] sm:$0xff]  ;;  %p1171_p8 = pnand %p1170_p7, %p1164_p4 }
  0x52   :  { %v1002_v30 = vpack.c.bf16 %v263_v28, %v262_v27  ;;  %v264_v33 = vld [vmem:[#allocation7 + $0x50] sm:$0xff]  ;;  %v265_v34 = vld [vmem:[#allocation7 + $0x58] sm:$0xff]  ;;  %v974_v35 = vpack.c.bf16 %v104_v32, %v103_v31  ;;  %v105_v37 = vld [vmem:[#allocation5 + $0x60] sm:$0xff] }
  0x53   :  { %v1006_v36 = vpack.c.bf16 %v265_v34, %v264_v33  ;;  %v106_v38 = vld [vmem:[#allocation5 + $0x68] sm:$0xff]  ;;  %v266_v39 = vld [vmem:[#allocation7 + $0x60] sm:$0xff]  ;;  %v107_v43 = vld [vmem:[#allocation5 + $0x70] sm:$0xff] }
  0x54   :  { %v267_v40 = vld [vmem:[#allocation7 + $0x68] sm:$0xff]  ;;  %v978_v41 = vpack.c.bf16 %v106_v38, %v105_v37  ;;  %v108_v44 = vld [vmem:[#allocation5 + $0x78] sm:$0xff]  ;;  %v268_v45 = vld [vmem:[#allocation7 + $0x70] sm:$0xff] }
  0x55   :  { %v1010_v42 = vpack.c.bf16 %v267_v40, %v266_v39  ;;  %v269_v46 = vld [vmem:[#allocation7 + $0x78] sm:$0xff]  ;;  %v982_v47 = vpack.c.bf16 %v108_v44, %v107_v43  ;;  %v415_v49 = vld [vmem:[#allocation8] sm:$0xff]  ;;  %v416_v50 = vld [vmem:[#allocation8 + $0x8] sm:$0xff] }
  0x56   :  { %961 = vmatpush3.bf16.xpose.msra.mxu0 %v958_v8  ;;  %v1014_v48 = vpack.c.bf16 %v269_v46, %v268_v45  ;;  %v1018_v51 = vpack.c.bf16 %v416_v50, %v415_v49  ;;  %v417_v52 = vld [vmem:[#allocation8 + $0x10] sm:$0xff]  ;;  %v418_v53 = vld [vmem:[#allocation8 + $0x18] sm:$0xff]  ;;  %v1361_v54 = vld [vmem:[#allocation2 + $0x8] sm:$0xff] }
  0x57   :  { %993 = vmatpush3.bf16.xpose.msra.mxu1 %v990_v11  ;;  %963 = vmatprep.subr.bf16.mxu0 %v962_v16  ;;  %v1022_v55 = vpack.c.bf16 %v418_v53, %v417_v52  ;;  %v1364_v56 = vld [vmem:[#allocation2 + $0x10] sm:$0xff]  ;;  %v1367_v57 = vld [vmem:[#allocation2 + $0x18] sm:$0xff]  ;;  %v1369_v58 = vld [vmem:[#allocation2 + $0x20] sm:$0xff] }
  0x58   :  { %995 = vmatprep.subr.bf16.mxu1 %v994_v17  ;;  %v419_v59 = vld [vmem:[#allocation8 + $0x20] sm:$0xff]  ;;  %v420_v60 = vld [vmem:[#allocation8 + $0x28] sm:$0xff]  ;;  %v1380_v63 = vld [vmem:[#allocation2 + $0x30] sm:$0xff] }
  0x59   :  { %v1376_v61 = vld [vmem:[#allocation2 + $0x28] sm:$0xff]  ;;  %v1026_v62 = vpack.c.bf16 %v420_v60, %v419_v59  ;;  %v1383_v0 = vld [vmem:[#allocation2 + $0x38] sm:$0xff]  ;;  %v85_v1 = vld [vmem:[#allocation2 + $0x40] sm:$0xff] }
  0x5a   :  { %v421_v2 = vld [vmem:[#allocation8 + $0x30] sm:$0xff]  ;;  %v422_v3 = vld [vmem:[#allocation8 + $0x38] sm:$0xff]  ;;  %v86_v4 = vld [vmem:[#allocation2 + $0x48] sm:$0xff] }
  0x5b   :  { %v1030_v5 = vpack.c.bf16 %v422_v3, %v421_v2  ;;  %v87_v6 = vld [vmem:[#allocation2 + $0x50] sm:$0xff]  ;;  %v88_v7 = vld [vmem:[#allocation2 + $0x58] sm:$0xff]  ;;  %v89_v8 = vld [vmem:[#allocation2 + $0x60] sm:$0xff] }
  0x5c   :  { %v423_v9 = vld [vmem:[#allocation8 + $0x40] sm:$0xff]  ;;  %v424_v10 = vld [vmem:[#allocation8 + $0x48] sm:$0xff]  ;;  %v91_v13 = vld [vmem:[#allocation2 + $0x70] sm:$0xff] }
  0x5d   :  { %v90_v11 = vld [vmem:[#allocation2 + $0x68] sm:$0xff]  ;;  %v1034_v12 = vpack.c.bf16 %v424_v10, %v423_v9  ;;  %v92_v14 = vld [vmem:[#allocation2 + $0x78] sm:$0xff]  ;;  %v425_v15 = vld [vmem:[#allocation8 + $0x50] sm:$0xff] }
  0x5e   :  { %965 = vmatpush3.bf16.xpose.msra.mxu0 %v962_v16  ;;  %v426_v16 = vld [vmem:[#allocation8 + $0x58] sm:$0xff]  ;;  %v427_v19 = vld [vmem:[#allocation8 + $0x60] sm:$0xff]  ;;  %v428_v20 = vld [vmem:[#allocation8 + $0x68] sm:$0xff] }
  0x5f   :  { %997 = vmatpush3.bf16.xpose.msra.mxu1 %v994_v17  ;;  %967 = vmatprep.subr.bf16.mxu0 %v966_v23  ;;  %v1038_v17 = vpack.c.bf16 %v426_v16, %v425_v15  ;;  %v1042_v21 = vpack.c.bf16 %v428_v20, %v427_v19  ;;  %v429_v22 = vld [vmem:[#allocation8 + $0x70] sm:$0xff] }
  0x60   :  { %999 = vmatprep.subr.bf16.mxu1 %v998_v24 }
  0x66   :  { %969 = vmatpush3.bf16.xpose.msra.mxu0 %v966_v23  ;;  %v430_v23 = vld [vmem:[#allocation8 + $0x78] sm:$0xff] }
  0x67   :  { %1001 = vmatpush3.bf16.xpose.msra.mxu1 %v998_v24  ;;  %971 = vmatprep.subr.bf16.mxu0 %v970_v29  ;;  %v1046_v24 = vpack.c.bf16 %v430_v23, %v429_v22 }
  0x68   :  { %1003 = vmatprep.subr.bf16.mxu1 %v1002_v30 }
  0x6e   :  { %973 = vmatpush3.bf16.xpose.msra.mxu0 %v970_v29 }
  0x6f   :  { %1005 = vmatpush3.bf16.xpose.msra.mxu1 %v1002_v30  ;;  %975 = vmatprep.subr.bf16.mxu0 %v974_v35 }
  0x70   :  { %1007 = vmatprep.subr.bf16.mxu1 %v1006_v36 }
  0x76   :  { %977 = vmatpush3.bf16.xpose.msra.mxu0 %v974_v35 }
  0x77   :  { %1009 = vmatpush3.bf16.xpose.msra.mxu1 %v1006_v36  ;;  %979 = vmatprep.subr.bf16.mxu0 %v978_v41 }
  0x78   :  { %1011 = vmatprep.subr.bf16.mxu1 %v1010_v42 }
  0x7e   :  { %981 = vmatpush3.bf16.xpose.msra.mxu0 %v978_v41 }
  0x7f   :  { %1013 = vmatpush3.bf16.xpose.msra.mxu1 %v1010_v42  ;;  %983 = vmatprep.subr.bf16.mxu0 %v982_v47 }
  0x80   :  { %1015 = vmatprep.subr.bf16.mxu1 %v1014_v48 }
  0x86   :  { %985 = vmatpush3.bf16.xpose.msra.mxu0 %v982_v47 }
  0x87   :  { %1017 = vmatpush3.bf16.xpose.msra.mxu1 %v1014_v48  ;;  %1019 = vmatprep.subr.bf16.mxu0 %v1018_v51 }
  0x88   :  { %1050 = vmatprep.subr.bf16.mxu1 %v1018_v51 }
  0x8d   :  { %819 = vmatmul.mubr.f32.vlgmr.msra.gmra.mrb[0].mxu0 %v1361_v54 }
  0x8e   :  { %875 = vmatmul.mubr.f32.vlgmr.msra.gmra.mrb[0].mxu1 %v1361_v54  ;;  %1021 = vmatpush3.bf16.xpose.msra.mxu0 %v1018_v51 }
  0x8f   :  { %1058 = vmatpush3.bf16.xpose.msra.mxu1 %v1018_v51  ;;  %1023 = vmatprep.subr.bf16.mxu0 %v1022_v55 }
  0x90   :  { %1051 = vmatprep.subr.bf16.mxu1 %v1022_v55  ;;  %821 = vmatprep.mubr.f32.mxu0 %v1364_v56 }
  0x91   :  { %877 = vmatprep.mubr.f32.mxu1 %v1364_v56  ;;  %822 = vmatmul.mubr.f32.gmra.mrb[2].mxu0 %v1367_v57 }
  0x92   :  { %878 = vmatmul.mubr.f32.gmra.mrb[2].mxu1 %v1367_v57  ;;  %824 = vmatprep.mubr.f32.mxu0 %v1369_v58 }
  0x93   :  { %880 = vmatprep.mubr.f32.mxu1 %v1369_v58 }
  0x95   :  { %825 = vmatmul.mubr.f32.gmra.mrb[4].mxu0 %v1376_v61 }
  0x96   :  { %1025 = vmatpush3.bf16.xpose.msra.mxu0 %v1022_v55  ;;  %881 = vmatmul.mubr.f32.gmra.mrb[4].mxu1 %v1376_v61 }
  0x97   :  { %1059 = vmatpush3.bf16.xpose.msra.mxu1 %v1022_v55  ;;  %1027 = vmatprep.subr.bf16.mxu0 %v1026_v62 }
  0x98   :  { %1052 = vmatprep.subr.bf16.mxu1 %v1026_v62  ;;  %827 = vmatprep.mubr.f32.mxu0 %v1380_v63 }
  0x99   :  { %883 = vmatprep.mubr.f32.mxu1 %v1380_v63  ;;  %828 = vmatmul.mubr.f32.gmra.mrb[6].mxu0 %v1383_v0 }
  0x9a   :  { %884 = vmatmul.mubr.f32.gmra.mrb[6].mxu1 %v1383_v0  ;;  %830 = vmatprep.mubr.f32.mxu0 %v85_v1 }
  0x9b   :  { %886 = vmatprep.mubr.f32.mxu1 %v85_v1 }
  0x9d   :  { %831 = vmatmul.mubr.f32.gmra.mrb[8].mxu0 %v86_v4 }
  0x9e   :  { %1029 = vmatpush3.bf16.xpose.msra.mxu0 %v1026_v62  ;;  %887 = vmatmul.mubr.f32.gmra.mrb[8].mxu1 %v86_v4 }
  0x9f   :  { %1060 = vmatpush3.bf16.xpose.msra.mxu1 %v1026_v62  ;;  %1031 = vmatprep.subr.bf16.mxu0 %v1030_v5 }
  0xa0   :  { %1053 = vmatprep.subr.bf16.mxu1 %v1030_v5  ;;  %833 = vmatprep.mubr.f32.mxu0 %v87_v6 }
  0xa1   :  { %889 = vmatprep.mubr.f32.mxu1 %v87_v6  ;;  %834 = vmatmul.mubr.f32.gmra.mrb[10].mxu0 %v88_v7 }
  0xa2   :  { %890 = vmatmul.mubr.f32.gmra.mrb[10].mxu1 %v88_v7  ;;  %836 = vmatprep.mubr.f32.mxu0 %v89_v8 }
  0xa3   :  { %892 = vmatprep.mubr.f32.mxu1 %v89_v8 }
  0xa5   :  { %837 = vmatmul.mubr.f32.gmra.mrb[12].mxu0 %v90_v11 }
  0xa6   :  { %1033 = vmatpush3.bf16.xpose.msra.mxu0 %v1030_v5  ;;  %893 = vmatmul.mubr.f32.gmra.mrb[12].mxu1 %v90_v11 }
  0xa7   :  { %1061 = vmatpush3.bf16.xpose.msra.mxu1 %v1030_v5  ;;  %1035 = vmatprep.subr.bf16.mxu0 %v1034_v12 }
  0xa8   :  { %1054 = vmatprep.subr.bf16.mxu1 %v1034_v12  ;;  %839 = vmatprep.mubr.f32.mxu0 %v91_v13 }
  0xa9   :  { %895 = vmatprep.mubr.f32.mxu1 %v91_v13  ;;  %840 = vmatmul.mubr.f32.gmra.mrb[14].mxu0 %v92_v14 }
  0xaa   :  { %896 = vmatmul.mubr.f32.gmra.mrb[14].mxu1 %v92_v14  ;;  %930 = vmatprep.mubr.f32.mxu0 %v1357_v18 }
  0xab   :  { %942 = vmatprep.mubr.f32.mxu1 %v85_v1 }
  0xae   :  { %1037 = vmatpush3.bf16.xpose.msra.mxu0 %v1034_v12 }
  0xaf   :  { %1062 = vmatpush3.bf16.xpose.msra.mxu1 %v1034_v12  ;;  %1039 = vmatprep.subr.bf16.mxu0 %v1038_v17 }
  0xb0   :  { %1055 = vmatprep.subr.bf16.mxu1 %v1038_v17 }
  0xb6   :  { %1041 = vmatpush3.bf16.xpose.msra.mxu0 %v1038_v17 }
  0xb7   :  { %1063 = vmatpush3.bf16.xpose.msra.mxu1 %v1038_v17  ;;  %1043 = vmatprep.subr.bf16.mxu0 %v1042_v21 }
  0xb8   :  { %1056 = vmatprep.subr.bf16.mxu1 %v1042_v21 }
  0xbe   :  { %1045 = vmatpush3.bf16.xpose.msra.mxu0 %v1042_v21 }
  0xbf   :  { %1064 = vmatpush3.bf16.xpose.msra.mxu1 %v1042_v21  ;;  %1047 = vmatprep.subr.bf16.mxu0 %v1046_v24 }
  0xc0   :  { %1057 = vmatprep.subr.bf16.mxu1 %v1046_v24 }
  0xc6   :  { %1049 = vmatpush3.bf16.xpose.msra.mxu0 %v1046_v24 }
  0xc7   :  { %1065 = vmatpush3.bf16.xpose.msra.mxu1 %v1046_v24 }
  0xcd   :  { %931 = vmatmul.mubr.f32.vlgmr.msra.gmra.mrb[16].mxu0 %v1361_v54 }
  0xce   :  { %943 = vmatmul.mubr.f32.vlgmr.msra.gmra.mrb[16].mxu1 %v86_v4  ;;  %933 = vmatprep.mubr.f32.mxu0 %v1364_v56 }
  0xcf   :  { %945 = vmatprep.mubr.f32.mxu1 %v87_v6 }
  0xd1   :  { %934 = vmatmul.mubr.f32.gmra.mrb[18].mxu0 %v1367_v57 }
  0xd2   :  { %946 = vmatmul.mubr.f32.gmra.mrb[18].mxu1 %v88_v7  ;;  %936 = vmatprep.mubr.f32.mxu0 %v1369_v58 }
  0xd3   :  { %948 = vmatprep.mubr.f32.mxu1 %v89_v8 }
  0xd5   :  { %937 = vmatmul.mubr.f32.gmra.mrb[20].mxu0 %v1376_v61 }
  0xd6   :  { %949 = vmatmul.mubr.f32.gmra.mrb[20].mxu1 %v90_v11  ;;  %939 = vmatprep.mubr.f32.mxu0 %v1380_v63 }
  0xd7   :  { %951 = vmatprep.mubr.f32.mxu1 %v91_v13 }
  0xd9   :  { %940 = vmatmul.mubr.f32.gmra.mrb[22].mxu0 %v1383_v0 }
  0xda   :  { %952 = vmatmul.mubr.f32.gmra.mrb[22].mxu1 %v92_v14 }
 0x160   :  { %v820_v18 = vpop.f32.mrb[0].mxu0 }
 0x161   :  { %v577_v25 = vmul.f32 0.17677669, %v820_v18  ;;  %v876_v26 = vpop.f32.mrb[0].mxu1  ;;  %v175_v27 = vpop.f32.mrb[1].mxu0 }
 0x162   :  { %609 = vst [vmem:[#allocation11 + $0x8] sm:$0xff] %v876_v26  ;;  %v576_v28 = vmul.f32 0.17677669, %v175_v27  ;;  %v336_v29 = vpop.f32.mrb[1].mxu1 }
 0x163   :  { %593 = vst [vmem:[#allocation10 + $0x8] sm:$0xff] %v577_v25  ;;  %608 = vst [vmem:[#allocation11] sm:$0xff] %v336_v29 }
 0x164   :  { %592 = vst [vmem:[#allocation10] sm:$0xff] %v576_v28  ;;  %v823_v30 = vpop.f32.mrb[2].mxu0 }
 0x165   :  { %v579_v31 = vmul.f32 0.17677669, %v823_v30  ;;  %v879_v32 = vpop.f32.mrb[2].mxu1  ;;  %v185_v33 = vpop.f32.mrb[3].mxu0 }
 0x166   :  { %611 = vst [vmem:[#allocation11 + $0x18] sm:$0xff] %v879_v32  ;;  %v578_v34 = vmul.f32 0.17677669, %v185_v33  ;;  %v346_v35 = vpop.f32.mrb[3].mxu1 }
 0x167   :  { %595 = vst [vmem:[#allocation10 + $0x18] sm:$0xff] %v579_v31  ;;  %610 = vst [vmem:[#allocation11 + $0x10] sm:$0xff] %v346_v35 }
 0x168   :  { %594 = vst [vmem:[#allocation10 + $0x10] sm:$0xff] %v578_v34  ;;  %v826_v36 = vpop.f32.mrb[4].mxu0 }
 0x169   :  { %v581_v37 = vmul.f32 0.17677669, %v826_v36  ;;  %v882_v38 = vpop.f32.mrb[4].mxu1  ;;  %v195_v39 = vpop.f32.mrb[5].mxu0 }
 0x16a   :  { %613 = vst [vmem:[#allocation11 + $0x28] sm:$0xff] %v882_v38  ;;  %v580_v40 = vmul.f32 0.17677669, %v195_v39  ;;  %v356_v41 = vpop.f32.mrb[5].mxu1 }
 0x16b   :  { %597 = vst [vmem:[#allocation10 + $0x28] sm:$0xff] %v581_v37  ;;  %612 = vst [vmem:[#allocation11 + $0x20] sm:$0xff] %v356_v41 }
 0x16c   :  { %596 = vst [vmem:[#allocation10 + $0x20] sm:$0xff] %v580_v40  ;;  %v829_v42 = vpop.f32.mrb[6].mxu0 }
 0x16d   :  { %v583_v43 = vmul.f32 0.17677669, %v829_v42  ;;  %v885_v44 = vpop.f32.mrb[6].mxu1  ;;  %v205_v45 = vpop.f32.mrb[7].mxu0 }
 0x16e   :  { %615 = vst [vmem:[#allocation11 + $0x38] sm:$0xff] %v885_v44  ;;  %v582_v46 = vmul.f32 0.17677669, %v205_v45  ;;  %v366_v47 = vpop.f32.mrb[7].mxu1 }
 0x16f   :  { %599 = vst [vmem:[#allocation10 + $0x38] sm:$0xff] %v583_v43  ;;  %614 = vst [vmem:[#allocation11 + $0x30] sm:$0xff] %v366_v47 }
 0x170   :  { %598 = vst [vmem:[#allocation10 + $0x30] sm:$0xff] %v582_v46  ;;  %v832_v48 = vpop.f32.mrb[8].mxu0 }
 0x171   :  { %v585_v49 = vmul.f32 0.17677669, %v832_v48  ;;  %v888_v50 = vpop.f32.mrb[8].mxu1  ;;  %v215_v51 = vpop.f32.mrb[9].mxu0 }
 0x172   :  { %617 = vst [vmem:[#allocation11 + $0x48] sm:$0xff] %v888_v50  ;;  %v584_v52 = vmul.f32 0.17677669, %v215_v51  ;;  %v376_v53 = vpop.f32.mrb[9].mxu1 }
 0x173   :  { %601 = vst [vmem:[#allocation10 + $0x48] sm:$0xff] %v585_v49  ;;  %616 = vst [vmem:[#allocation11 + $0x40] sm:$0xff] %v376_v53 }
 0x174   :  { %600 = vst [vmem:[#allocation10 + $0x40] sm:$0xff] %v584_v52  ;;  %v835_v54 = vpop.f32.mrb[10].mxu0 }
 0x175   :  { %v587_v55 = vmul.f32 0.17677669, %v835_v54  ;;  %v891_v56 = vpop.f32.mrb[10].mxu1  ;;  %v225_v57 = vpop.f32.mrb[11].mxu0 }
 0x176   :  { %619 = vst [vmem:[#allocation11 + $0x58] sm:$0xff] %v891_v56  ;;  %v586_v58 = vmul.f32 0.17677669, %v225_v57  ;;  %v386_v59 = vpop.f32.mrb[11].mxu1 }
 0x177   :  { %603 = vst [vmem:[#allocation10 + $0x58] sm:$0xff] %v587_v55  ;;  %618 = vst [vmem:[#allocation11 + $0x50] sm:$0xff] %v386_v59 }
 0x178   :  { %602 = vst [vmem:[#allocation10 + $0x50] sm:$0xff] %v586_v58  ;;  %v838_v60 = vpop.f32.mrb[12].mxu0 }
 0x179   :  { %v589_v61 = vmul.f32 0.17677669, %v838_v60  ;;  %v894_v62 = vpop.f32.mrb[12].mxu1  ;;  %v235_v63 = vpop.f32.mrb[13].mxu0 }
 0x17a   :  { %621 = vst [vmem:[#allocation11 + $0x68] sm:$0xff] %v894_v62  ;;  %v588_v0 = vmul.f32 0.17677669, %v235_v63  ;;  %v396_v1 = vpop.f32.mrb[13].mxu1 }
 0x17b   :  { %605 = vst [vmem:[#allocation10 + $0x68] sm:$0xff] %v589_v61  ;;  %620 = vst [vmem:[#allocation11 + $0x60] sm:$0xff] %v396_v1 }
 0x17c   :  { %604 = vst [vmem:[#allocation10 + $0x60] sm:$0xff] %v588_v0  ;;  %v841_v2 = vpop.f32.mrb[14].mxu0 }
 0x17d   :  { %v591_v3 = vmul.f32 0.17677669, %v841_v2  ;;  %v897_v4 = vpop.f32.mrb[14].mxu1  ;;  %v245_v5 = vpop.f32.mrb[15].mxu0 }
 0x17e   :  { %623 = vst [vmem:[#allocation11 + $0x78] sm:$0xff] %v897_v4  ;;  %v590_v6 = vmul.f32 0.17677669, %v245_v5  ;;  %v406_v7 = vpop.f32.mrb[15].mxu1 }
 0x17f   :  { %607 = vst [vmem:[#allocation10 + $0x78] sm:$0xff] %v591_v3  ;;  %622 = vst [vmem:[#allocation11 + $0x70] sm:$0xff] %v406_v7 }
 0x180   :  { %606 = vst [vmem:[#allocation10 + $0x70] sm:$0xff] %v590_v6 }
 0x181   :  { %1174 = shalt.err (!%p1171_p8)
}
 0x182   :  { %s1175_s28 = scalar_lea.hbm %s1454_s5, 2048 }
 0x183   :  { %p1176_p9 = scmp.ne.s32.totalorder %s1454_s5, %s1175_s28  ;;  %p1179_p10 = scmp.lt.u32.totalorder %s1175_s28, %s1454_s5 }
 0x185   :  { %p1181_p11 = pnand %p1179_p10, %p1176_p9 }
 0x187   :  { %1184 = shalt.err (!%p1181_p11)
}
 0x188   :  { %663 = dma.vmem_to_hbm [thread:$0]  %s658_s21, 2048, %s1454_s5, [#allocation12], %s1241_s9, %s1241_s9, %s1242_s10  }
 0x189   :  { %s1185_s24 = scalar_lea.vmem %s1397_s23, 2048  ;;  %p1190_p13 = scmp.lt.s32.totalorder %s1397_s23, %s1397_s23 }
 0x18a   :  { %p1186_p12 = scmp.ne.s32.totalorder %s1397_s23, %s1185_s24  ;;  %p1191_p0 = scmp.lt.s32.totalorder %s1185_s24, %s1185_s24 }
 0x18c   :  { %p1192_p1 = por %p1191_p0, %p1190_p13 }
 0x18e   :  { %p1193_p2 = pnand %p1192_p1, %p1186_p12 }
 0x190   :  { %1196 = shalt.err (!%p1193_p2)
}
 0x191   :  { %s1197_s14 = scalar_lea.hbm %s1453_s4, 2048 }
 0x192   :  { %p1198_p3 = scmp.ne.s32.totalorder %s1453_s4, %s1197_s14  ;;  %p1201_p4 = scmp.lt.u32.totalorder %s1197_s14, %s1453_s4 }
 0x194   :  { %p1203_p5 = pnand %p1201_p4, %p1198_p3 }
 0x196   :  { %1206 = shalt.err (!%p1203_p5)
}
 0x197   :  { %651 = dma.vmem_to_hbm [thread:$0]  %s1397_s23, 2048, %s1453_s4, [#allocation4], %s1241_s9, %s1241_s9, %s1242_s10  }
 0x198   :  { %s1247_s4 = smov [#allocation13]  }
 0x199   :  { %s669_s20 = sshll.u32 %s1247_s4, 4  ;;  %s670_s20 = int_to_ptr.vmem [resolvable:$true] %s669_s20 }
 0x19a   :  { %s1207_s2 = scalar_lea.vmem %s670_s20, 2048  ;;  %p1212_p7 = scmp.lt.s32.totalorder %s670_s20, %s670_s20 }
 0x19b   :  { %p1208_p6 = scmp.ne.s32.totalorder %s670_s20, %s1207_s2  ;;  %p1213_p8 = scmp.lt.s32.totalorder %s1207_s2, %s1207_s2 }
 0x19d   :  { %p1214_p9 = por %p1213_p8, %p1212_p7 }
 0x19f   :  { %p1215_p10 = pnand %p1214_p9, %p1208_p6 }
 0x1a0   :  { %v932_v8 = vpop.f32.mrb[16].mxu0 }
 0x1a1   :  { %625 = vst [vmem:[#allocation13 + $0x8] sm:$0xff] %v932_v8  ;;  %v944_v9 = vpop.f32.mrb[16].mxu1  ;;  %v497_v10 = vpop.f32.mrb[17].mxu0 }
 0x1a2   :  { %633 = vst [vmem:[#allocation13 + $0x48] sm:$0xff] %v944_v9  ;;  %624 = vst [vmem:[#allocation13] sm:$0xff] %v497_v10  ;;  %v537_v11 = vpop.f32.mrb[17].mxu1 }
 0x1a3   :  { %632 = vst [vmem:[#allocation13 + $0x40] sm:$0xff] %v537_v11 }
 0x1a4   :  { %v935_v12 = vpop.f32.mrb[18].mxu0 }
 0x1a5   :  { %627 = vst [vmem:[#allocation13 + $0x18] sm:$0xff] %v935_v12  ;;  %v947_v13 = vpop.f32.mrb[18].mxu1  ;;  %v507_v14 = vpop.f32.mrb[19].mxu0 }
 0x1a6   :  { %635 = vst [vmem:[#allocation13 + $0x58] sm:$0xff] %v947_v13  ;;  %626 = vst [vmem:[#allocation13 + $0x10] sm:$0xff] %v507_v14  ;;  %v547_v15 = vpop.f32.mrb[19].mxu1 }
 0x1a7   :  { %634 = vst [vmem:[#allocation13 + $0x50] sm:$0xff] %v547_v15 }
 0x1a8   :  { %v938_v16 = vpop.f32.mrb[20].mxu0 }
 0x1a9   :  { %629 = vst [vmem:[#allocation13 + $0x28] sm:$0xff] %v938_v16  ;;  %v950_v17 = vpop.f32.mrb[20].mxu1  ;;  %v517_v19 = vpop.f32.mrb[21].mxu0 }
 0x1aa   :  { %637 = vst [vmem:[#allocation13 + $0x68] sm:$0xff] %v950_v17  ;;  %628 = vst [vmem:[#allocation13 + $0x20] sm:$0xff] %v517_v19  ;;  %v557_v20 = vpop.f32.mrb[21].mxu1 }
 0x1ab   :  { %636 = vst [vmem:[#allocation13 + $0x60] sm:$0xff] %v557_v20 }
 0x1ac   :  { %v941_v21 = vpop.f32.mrb[22].mxu0 }
 0x1ad   :  { %631 = vst [vmem:[#allocation13 + $0x38] sm:$0xff] %v941_v21  ;;  %v953_v22 = vpop.f32.mrb[22].mxu1  ;;  %v527_v23 = vpop.f32.mrb[23].mxu0 }
 0x1ae   :  { %639 = vst [vmem:[#allocation13 + $0x78] sm:$0xff] %v953_v22  ;;  %630 = vst [vmem:[#allocation13 + $0x30] sm:$0xff] %v527_v23  ;;  %v567_v24 = vpop.f32.mrb[23].mxu1 }
 0x1af   :  { %638 = vst [vmem:[#allocation13 + $0x70] sm:$0xff] %v567_v24 }
 0x1b0   :  { %1218 = shalt.err (!%p1215_p10)
}
 0x1b1   :  { %s1219_s21 = scalar_lea.hbm %s1455_s6, 2048 }
 0x1b2   :  { %p1220_p11 = scmp.ne.s32.totalorder %s1455_s6, %s1219_s21  ;;  %p1223_p12 = scmp.lt.u32.totalorder %s1219_s21, %s1455_s6 }
 0x1b4   :  { %p1225_p13 = pnand %p1223_p12, %p1220_p11 }
 0x1b6   :  { %1228 = shalt.err (!%p1225_p13)
}
 0x1b7   :  { %675 = dma.vmem_to_hbm [thread:$0]  %s670_s20, 2048, %s1455_s6, [#allocation12], %s1241_s9, %s1241_s9, %s1242_s10  }
 0x1b8   :  { %1235 = dma.done.wait [#allocation4], 2048  }
 0x1b9   :  { %1236 = vsyncadd [#allocation4], 4294965248 }
 0x1ba   :  { %1237 = dma.done.wait [#allocation12], 4096  }
 0x1bb   :  { %1238 = vsyncadd [#allocation12], 4294963200 }
 0x1bc   :  { %685 = vsyncpa [#allocation3], 1 }
 0x1bd   :  { %686 = vsyncpa [#allocation6], 1 }
 0x1be   :  { %687 = vsyncpa [#allocation9], 1 }
 0x1bf   :  { %688 = vsyncpa [#allocation4], 1 }
 0x1c0   :  { %689 = vsyncpa [#allocation12], 1 }

</bundles_post_ra>
